<compile_context>
chip_gen: v5e
topology: v5e:2x2
jax: 0.10.0
libtpu: 0.0.40
codegen_flags: <defaults>
</compile_context>

<pallas_src>
import functools

import jax
import jax.numpy as jnp
from jax.experimental import pallas as pl
from jax.experimental.pallas import tpu as pltpu

_LANE = 128      # vreg lane width
_SUBLANE = 8     # vreg sublane count (f32)


def _round_up(x, m):
    return (x + m - 1) // m * m


def _make_mlp_kernel(num_layers, compute_dtype):
    """Fused MLP kernel. Ref order: x, w0, b0, w1, b1, ..., out.

    ReLU after every layer except the last. Matmuls accumulate in f32.
    """

    def kernel(*refs):
        x_ref = refs[0]
        o_ref = refs[-1]
        param_refs = refs[1:-1]

        x = x_ref[...]
        if x.dtype != compute_dtype:
            x = x.astype(compute_dtype)

        for i in range(num_layers):
            w = param_refs[2 * i][...]
            b = param_refs[2 * i + 1][...]
            if w.dtype != compute_dtype:
                w = w.astype(compute_dtype)
            if b.dtype != jnp.float32:
                b = b.astype(jnp.float32)

            # MXU matmul with f32 accumulation; bias add + ReLU on the VPU.
            x = jnp.dot(x, w, preferred_element_type=jnp.float32) + b
            if i < num_layers - 1:
                x = jnp.maximum(x, 0.0)
                if compute_dtype != jnp.float32:
                    x = x.astype(compute_dtype)  # feed next MXU pass in bf16

        o_ref[...] = x.astype(o_ref.dtype)

    return kernel


@functools.partial(jax.jit, static_argnames=("n_action_dims", "compute_dtype"))
def policy_network_forward(state, params, n_action_dims,
                           compute_dtype=jnp.float32):
    """Fused, batch-tiled, lane-padded Pallas forward pass.

    Args:
      state:  [B, n_state_dims] float32 (or bf16).
      params: flat tuple (w0, b0, w1, b1, ...) with wi: [in_i, out_i],
              bi: [1, out_i].
      n_action_dims: output feature count (static).
      compute_dtype: matmul input dtype (jnp.float32 or jnp.bfloat16);
                     accumulation is always f32.

    Returns:
      [B, n_action_dims] float32 logits / action means (no final activation).
    """
    num_layers = len(params) // 2
    batch, n_state_dims = state.shape

    in_dims = [params[2 * i].shape[0] for i in range(num_layers)]
    out_dims = [params[2 * i].shape[1] for i in range(num_layers)]
    assert in_dims[0] == n_state_dims and out_dims[-1] == n_action_dims

    # --- lane-pad every feature dim to a multiple of 128 ---------------------
    in_pad = [_round_up(d, _LANE) for d in in_dims]
    out_pad = [_round_up(d, _LANE) for d in out_dims]

    # --- batch tiling: multiples of 8 sublanes, up to 512 rows per grid step --
    b8 = _round_up(batch, _SUBLANE)
    tile_b = 512 if b8 >= 512 else b8
    b_pad = _round_up(batch, tile_b)
    grid = (b_pad // tile_b,)

    # Zero-padding is inert: padded weight rows/cols and bias lanes are zero,
    # relu(0) = 0, so padded lanes stay exactly zero through every layer.
    x = jnp.pad(state, ((0, b_pad - batch), (0, in_pad[0] - n_state_dims)))
    padded_params = []
    for i in range(num_layers):
        w, b = params[2 * i], params[2 * i + 1]
        padded_params.append(
            jnp.pad(w, ((0, in_pad[i] - w.shape[0]), (0, out_pad[i] - w.shape[1]))))
        padded_params.append(
            jnp.pad(b, ((0, 0), (0, out_pad[i] - b.shape[1]))))

    kernel = _make_mlp_kernel(num_layers, compute_dtype)

    # State/out stream through VMEM per batch tile; weights/biases are
    # VMEM-resident across the whole grid (constant index_map -> (0, 0)).
    in_specs = [pl.BlockSpec((tile_b, in_pad[0]), lambda i: (i, 0))]
    for li in range(num_layers):
        in_specs.append(
            pl.BlockSpec((in_pad[li], out_pad[li]), lambda i: (0, 0)))
        in_specs.append(
            pl.BlockSpec((1, out_pad[li]), lambda i: (0, 0)))
    out_specs = pl.BlockSpec((tile_b, out_pad[-1]), lambda i: (i, 0))

    # Advisory cost estimate for the XLA scheduler.
    flops = 2 * b_pad * sum(ip * op for ip, op in zip(in_pad, out_pad))
    bytes_accessed = (
        x.size * x.dtype.itemsize
        + sum(p.size * p.dtype.itemsize for p in padded_params)
        + b_pad * out_pad[-1] * 4
    )

    out_padded = pl.pallas_call(
        kernel,
        out_shape=jax.ShapeDtypeStruct((b_pad, out_pad[-1]), jnp.float32),
        grid=grid,
        in_specs=in_specs,
        out_specs=out_specs,
        compiler_params=pltpu.CompilerParams(
            dimension_semantics=("parallel",),   # shard batch tiles across TCs (v7x)
        ),
        cost_estimate=pl.CostEstimate(
            flops=flops, transcendentals=0, bytes_accessed=bytes_accessed),
    )(x, *padded_params)

    # Strip batch + lane padding outside the kernel.
    return out_padded[:batch, :n_action_dims]


def init_policy_params(key, n_state_dims, n_action_dims, hidden_units=(16,)):
    """Deterministic parameter init mirroring the PyTorch module's shapes.

    nn.Linear(in, out) -> weight [out, in], bias [out]. We store the weight
    transposed as [in, out] and bias as [1, out] for the kernel.
    PyTorch default init: U(-1/sqrt(in), 1/sqrt(in)) for both weight and bias.
    """
    params = []
    dims = [n_state_dims] + list(hidden_units) + [n_action_dims]
    for i in range(len(dims) - 1):
        in_d, out_d = dims[i], dims[i + 1]
        key, kw, kb = jax.random.split(key, 3)
        bound = 1.0 / jnp.sqrt(jnp.float32(in_d))
        w = jax.random.uniform(kw, (in_d, out_d), jnp.float32, -bound, bound)
        b = jax.random.uniform(kb, (1, out_d), jnp.float32, -bound, bound)
        params += [w, b]
    return tuple(params)


def policy_network_reference(state, params):
    """Plain-JAX reference matching the PyTorch forward."""
    num_layers = len(params) // 2
    x = state
    for i in range(num_layers):
        w, b = params[2 * i], params[2 * i + 1]
        x = x @ w + b
        if i < num_layers - 1:
            x = jnp.maximum(x, 0.0)
    return x


if __name__ == "__main__":
    key = jax.random.PRNGKey(0)

    # Small shapes consistent with the module: batch=8 states of dim 32,
    # hidden_units=[16] (module default), 4 action dims.
    # NOTE: at these toy sizes the kernel is pure launch/DMA overhead; the
    # design above only pays off once many states are batched per call.
    batch = 8
    n_state_dims = 32
    n_action_dims = 4
    hidden_units = (16,)

    key, k_state = jax.random.split(key)
    state = jax.random.normal(k_state, (batch, n_state_dims), jnp.float32)

    params = init_policy_params(key, n_state_dims, n_action_dims, hidden_units)

    # f32 compute path (default; exact vs. reference).
    out = policy_network_forward(state, params, n_action_dims)
    out = jax.block_until_ready(out)

    ref = policy_network_reference(state, params)
    assert out.shape == (batch, n_action_dims), out.shape
    assert jnp.allclose(out, ref, atol=1e-5, rtol=1e-5), "mismatch vs reference"

    # bf16-input / f32-accumulate path (v6e/v7x MXU-friendly) — sanity run only.
    out_bf16 = policy_network_forward(state, params, n_action_dims,
                                      compute_dtype=jnp.bfloat16)
    out_bf16 = jax.block_until_ready(out_bf16)
    assert out_bf16.shape == (batch, n_action_dims)
    assert bool(jnp.all(jnp.isfinite(out_bf16)))

    print("KERNEL_OK")
</pallas_src>

<mosaic_0001>
module attributes {stable_mosaic.version = 11 : i64} {
  func.func @kernel(%arg0: i32, %arg1: memref<8x128xf32, #tpu.memory_space<vmem>>, %arg2: memref<128x128xf32, #tpu.memory_space<vmem>>, %arg3: memref<1x128xf32, #tpu.memory_space<vmem>>, %arg4: memref<128x128xf32, #tpu.memory_space<vmem>>, %arg5: memref<1x128xf32, #tpu.memory_space<vmem>>, %arg6: memref<8x128xf32, #tpu.memory_space<vmem>>) attributes {dimension_semantics = [#tpu.dimension_semantics<parallel>], iteration_bounds = array<i64: 1>, scalar_prefetch = 0 : i64, scratch_operands = 0 : i64, tpu.core_type = #tpu.core_type<tc>, window_params = [{transform_indices = @transform_0, window_bounds = array<i64: 8, 128>}, {pipeline_mode = #tpu.pipeline_mode<synchronous>, transform_indices = @transform_1, window_bounds = array<i64: 128, 128>}, {pipeline_mode = #tpu.pipeline_mode<synchronous>, transform_indices = @transform_2, window_bounds = array<i64: 1, 128>}, {pipeline_mode = #tpu.pipeline_mode<synchronous>, transform_indices = @transform_3, window_bounds = array<i64: 128, 128>}, {pipeline_mode = #tpu.pipeline_mode<synchronous>, transform_indices = @transform_4, window_bounds = array<i64: 1, 128>}, {transform_indices = @transform_5, window_bounds = array<i64: 8, 128>}]} {
    %c0 = arith.constant 0 : index
    %c0_0 = arith.constant 0 : index
    %0 = vector.load %arg1[%c0, %c0_0] : memref<8x128xf32, #tpu.memory_space<vmem>>, vector<8x128xf32>
    %c0_1 = arith.constant 0 : index
    %c0_2 = arith.constant 0 : index
    %1 = vector.load %arg2[%c0_1, %c0_2] : memref<128x128xf32, #tpu.memory_space<vmem>>, vector<128x128xf32>
    %c0_3 = arith.constant 0 : index
    %c0_4 = arith.constant 0 : index
    %2 = vector.load %arg3[%c0_3, %c0_4] : memref<1x128xf32, #tpu.memory_space<vmem>>, vector<1x128xf32>
    %cst = arith.constant dense<0.000000e+00> : vector<8x128xf32>
    %3 = tpu.matmul %0, %1, %cst {dimension_numbers = #tpu.dot_dimension_numbers<[1], [0], [0], [1], [0, 0, 1, 1], [], []>} : vector<8x128xf32>, vector<128x128xf32>, vector<8x128xf32> -> vector<8x128xf32>
    %4 = vector.broadcast %2 : vector<1x128xf32> to vector<8x128xf32>
    %5 = arith.addf %3, %4 : vector<8x128xf32>
    %cst_5 = arith.constant 0.000000e+00 : f32
    %6 = vector.broadcast %cst_5 : f32 to vector<8x128xf32>
    %7 = arith.maximumf %5, %6 : vector<8x128xf32>
    %c0_6 = arith.constant 0 : index
    %c0_7 = arith.constant 0 : index
    %8 = vector.load %arg4[%c0_6, %c0_7] : memref<128x128xf32, #tpu.memory_space<vmem>>, vector<128x128xf32>
    %c0_8 = arith.constant 0 : index
    %c0_9 = arith.constant 0 : index
    %9 = vector.load %arg5[%c0_8, %c0_9] : memref<1x128xf32, #tpu.memory_space<vmem>>, vector<1x128xf32>
    %cst_10 = arith.constant dense<0.000000e+00> : vector<8x128xf32>
    %10 = tpu.matmul %7, %8, %cst_10 {dimension_numbers = #tpu.dot_dimension_numbers<[1], [0], [0], [1], [0, 0, 1, 1], [], []>} : vector<8x128xf32>, vector<128x128xf32>, vector<8x128xf32> -> vector<8x128xf32>
    %11 = vector.broadcast %9 : vector<1x128xf32> to vector<8x128xf32>
    %12 = arith.addf %10, %11 : vector<8x128xf32>
    %c0_11 = arith.constant 0 : index
    %c0_12 = arith.constant 0 : index
    %13 = vector.load %arg6[%c0_11, %c0_12] : memref<8x128xf32, #tpu.memory_space<vmem>>, vector<8x128xf32>
    tpu.vector_store %arg6[%c0_11, %c0_12], %12 {strides = array<i32>} : memref<8x128xf32, #tpu.memory_space<vmem>>, vector<8x128xf32>,
    return
  }
  func.func @transform_0(%arg0: i32) -> (i32, i32) {
    %c0_i32 = arith.constant 0 : i32
    %c0_i32_0 = arith.constant 0 : i32
    return %arg0, %c0_i32 : i32, i32
  }
  func.func @transform_1(%arg0: i32) -> (i32, i32) {
    %c0_i32 = arith.constant 0 : i32
    %c0_i32_0 = arith.constant 0 : i32
    %c0_i32_1 = arith.constant 0 : i32
    return %c0_i32, %c0_i32_0 : i32, i32
  }
  func.func @transform_2(%arg0: i32) -> (i32, i32) {
    %c0_i32 = arith.constant 0 : i32
    %c0_i32_0 = arith.constant 0 : i32
    %c0_i32_1 = arith.constant 0 : i32
    return %c0_i32, %c0_i32_0 : i32, i32
  }
  func.func @transform_3(%arg0: i32) -> (i32, i32) {
    %c0_i32 = arith.constant 0 : i32
    %c0_i32_0 = arith.constant 0 : i32
    %c0_i32_1 = arith.constant 0 : i32
    return %c0_i32, %c0_i32_0 : i32, i32
  }
  func.func @transform_4(%arg0: i32) -> (i32, i32) {
    %c0_i32 = arith.constant 0 : i32
    %c0_i32_0 = arith.constant 0 : i32
    %c0_i32_1 = arith.constant 0 : i32
    return %c0_i32, %c0_i32_0 : i32, i32
  }
  func.func @transform_5(%arg0: i32) -> (i32, i32) {
    %c0_i32 = arith.constant 0 : i32
    %c0_i32_0 = arith.constant 0 : i32
    return %arg0, %c0_i32 : i32, i32
  }
}

</mosaic_0001>

<bundles_post_ra>
// kernel: policy_network_forward.1
= control target key start
LH: loop header
LB: loop body
LE: loop exit
PB: predicated region body
PF: predicated region fallthrough
CT: control target
= control target key end

     0   :  { %s247_s1 = inlined_call_operand.vmem [shape: f32[128,128], index: 1, kind: input, shape index: {}]   ;;  %s248_s3 = inlined_call_operand.vmem [shape: f32[128,128], index: 3, kind: input, shape index: {}]   ;;  %s249_s2 = inlined_call_operand.vmem [shape: f32[1,128], index: 2, kind: input, shape index: {}]   ;;  %s250_s0 = inlined_call_operand.vmem [shape: f32[8,128], index: 0, kind: input, shape index: {}]   ;;  %s251_s4 = inlined_call_operand.vmem [shape: f32[1,128], index: 4, kind: input, shape index: {}]   ;;  %s252_s5 = inlined_call_operand.vmem [shape: f32[8,128], index: 5, kind: output, shape index: {}]  }
   0x1   :  { %v36_v0 = vld [vmem:[%s247_s1 + $0x78] sm:$0xff]  ;;  %v35_v1 = vld [vmem:[%s247_s1 + $0x70] sm:$0xff]  ;;  %v34_v2 = vld [vmem:[%s247_s1 + $0x68] sm:$0xff] }
   0x2   :  { %41 = vmatpush.msra.mxu0 %v36_v0  ;;  %v33_v3 = vld [vmem:[%s247_s1 + $0x60] sm:$0xff]  ;;  %v77_v4 = vld [vmem:[%s248_s3 + $0x78] sm:$0xff]  ;;  %v76_v6 = vld [vmem:[%s248_s3 + $0x70] sm:$0xff] }
   0x3   :  { %v32_v5 = vld [vmem:[%s247_s1 + $0x58] sm:$0xff]  ;;  %82 = vmatpush.msra.mxu1 %v77_v4  ;;  %v75_v7 = vld [vmem:[%s248_s3 + $0x68] sm:$0xff]  ;;  %v31_v8 = vld [vmem:[%s247_s1 + $0x50] sm:$0xff] }
   0x4   :  { %42 = vmatpush.msra.mxu0 %v35_v1  ;;  %v74_v9 = vld [vmem:[%s248_s3 + $0x60] sm:$0xff]  ;;  %v30_v10 = vld [vmem:[%s247_s1 + $0x48] sm:$0xff]  ;;  %v73_v11 = vld [vmem:[%s248_s3 + $0x58] sm:$0xff] }
   0x5   :  { %83 = vmatpush.msra.mxu1 %v76_v6  ;;  %v29_v12 = vld [vmem:[%s247_s1 + $0x40] sm:$0xff]  ;;  %v72_v13 = vld [vmem:[%s248_s3 + $0x50] sm:$0xff]  ;;  %v28_v14 = vld [vmem:[%s247_s1 + $0x38] sm:$0xff] }
   0x6   :  { %43 = vmatpush.msra.mxu0 %v34_v2  ;;  %v71_v15 = vld [vmem:[%s248_s3 + $0x48] sm:$0xff]  ;;  %v27_v16 = vld [vmem:[%s247_s1 + $0x30] sm:$0xff]  ;;  %v70_v17 = vld [vmem:[%s248_s3 + $0x40] sm:$0xff] }
   0x7   :  { %84 = vmatpush.msra.mxu1 %v75_v7  ;;  %v26_v18 = vld [vmem:[%s247_s1 + $0x28] sm:$0xff]  ;;  %v69_v19 = vld [vmem:[%s248_s3 + $0x38] sm:$0xff]  ;;  %v25_v20 = vld [vmem:[%s247_s1 + $0x20] sm:$0xff] }
   0x8   :  { %44 = vmatpush.msra.mxu0 %v33_v3  ;;  %v68_v21 = vld [vmem:[%s248_s3 + $0x30] sm:$0xff]  ;;  %v24_v22 = vld [vmem:[%s247_s1 + $0x18] sm:$0xff]  ;;  %v67_v23 = vld [vmem:[%s248_s3 + $0x28] sm:$0xff] }
   0x9   :  { %85 = vmatpush.msra.mxu1 %v74_v9  ;;  %v23_v24 = vld [vmem:[%s247_s1 + $0x10] sm:$0xff]  ;;  %v66_v25 = vld [vmem:[%s248_s3 + $0x20] sm:$0xff]  ;;  %v22_v26 = vld [vmem:[%s247_s1 + $0x8] sm:$0xff] }
   0xa   :  { %45 = vmatpush.msra.mxu0 %v32_v5  ;;  %v65_v27 = vld [vmem:[%s248_s3 + $0x18] sm:$0xff]  ;;  %v21_v28 = vld [vmem:[%s247_s1] sm:$0xff]  ;;  %v64_v30 = vld [vmem:[%s248_s3 + $0x10] sm:$0xff] }
   0xb   :  { %86 = vmatpush.msra.mxu1 %v73_v11  ;;  %v20_v29 = vld [vmem:[%s250_s0] sm:$0xff]  ;;  %v63_v31 = vld [vmem:[%s248_s3 + $0x8] sm:$0xff] }
   0xc   :  { %46 = vmatpush.msra.mxu0 %v31_v8  ;;  %v62_v32 = vld [vmem:[%s248_s3] sm:$0xff] }
   0xd   :  { %87 = vmatpush.msra.mxu1 %v72_v13  ;;  %v107_v33 = vld [vmem:[%s249_s2] ss:$0 sm:$0xff] }
   0xe   :  { %47 = vmatpush.msra.mxu0 %v30_v10  ;;  %v108_v37 = vld [vmem:[%s251_s4] ss:$0 sm:$0xff] }
   0xf   :  { %88 = vmatpush.msra.mxu1 %v71_v15 }
  0x10   :  { %48 = vmatpush.msra.mxu0 %v29_v12 }
  0x11   :  { %89 = vmatpush.msra.mxu1 %v70_v17 }
  0x12   :  { %49 = vmatpush.msra.mxu0 %v28_v14 }
  0x13   :  { %90 = vmatpush.msra.mxu1 %v69_v19 }
  0x14   :  { %50 = vmatpush.msra.mxu0 %v27_v16 }
  0x15   :  { %91 = vmatpush.msra.mxu1 %v68_v21 }
  0x16   :  { %51 = vmatpush.msra.mxu0 %v26_v18 }
  0x17   :  { %92 = vmatpush.msra.mxu1 %v67_v23 }
  0x18   :  { %52 = vmatpush.msra.mxu0 %v25_v20 }
  0x19   :  { %93 = vmatpush.msra.mxu1 %v66_v25 }
  0x1a   :  { %53 = vmatpush.msra.mxu0 %v24_v22 }
  0x1b   :  { %94 = vmatpush.msra.mxu1 %v65_v27 }
  0x1c   :  { %54 = vmatpush.msra.mxu0 %v23_v24 }
  0x1d   :  { %95 = vmatpush.msra.mxu1 %v64_v30 }
  0x1e   :  { %55 = vmatpush.msra.mxu0 %v22_v26 }
  0x1f   :  { %96 = vmatpush.msra.mxu1 %v63_v31 }
  0x20   :  { %56 = vmatpush.msra.mxu0 %v21_v28 }
  0x21   :  { %57 = vmatmul.f32.vlgmr.msra.gmra.mxu0 %v20_v29  ;;  %97 = vmatpush.msra.mxu1 %v62_v32 }
  0x9e   :  { %v58_v34 = vpop.f32.mrf.mxu0 }
  0x9f   :  { %v59_v35 = vadd.f32 %v107_v33, %v58_v34 }
  0xa1   :  { %v61_v36 = vmax.f32 %v59_v35, 0.0 }
  0xa3   :  { %98 = vmatmul.f32.vlgmr.msra.gmra.mxu1 %v61_v36 }
 0x120   :  { %v99_v38 = vpop.f32.mrf.mxu1 }
 0x121   :  { %v100_v39 = vadd.f32 %v108_v37, %v99_v38 }
 0x123   :  { %102 = vst [vmem:[%s252_s5] sm:$0xff] %v100_v39 }

</bundles_post_ra>
